<compile_context>
chip_gen: v7x
topology: tpu7x:2x2x1
jax: 0.10.0
libtpu: 0.0.40
codegen_flags: <defaults>
</compile_context>

<pallas_src>
import jax
import jax.numpy as jnp
from jax.experimental import pallas as pl
from jax.experimental.pallas import tpu as pltpu


def _round_up(x, m):
    return ((x + m - 1) // m) * m


# --------------------------------------------------------------------------
# Pallas kernel: fused MixedOp = one MXU matmul + bias add.
# --------------------------------------------------------------------------
def _mixed_op_kernel(x_ref,    # VMEM (TB, T)      batch_x tile       (f32)
                     w_ref,    # VMEM (T, N_pad)   pre-mixed weights  (bf16)
                     b_ref,    # VMEM (1, N_pad)   pre-mixed bias     (f32)
                     out_ref):  # VMEM (TB, N_pad) [pred | fc] slab   (f32)
    x = x_ref[...].astype(jnp.bfloat16)          # cheap in-kernel cast (VALU slack)
    acc = jnp.dot(x, w_ref[...], preferred_element_type=jnp.float32)
    out_ref[...] = acc + b_ref[...]


# --------------------------------------------------------------------------
# Generation-aware helpers
# --------------------------------------------------------------------------
def _tpu_vmem_bytes():
    try:
        return int(pltpu.get_tpu_info().vmem_capacity_bytes)
    except Exception:
        return 64 << 20            # conservative fallback (v7x per-core VMEM)


def _num_tensorcores_per_chip():
    try:
        kind = jax.devices()[0].device_kind.lower()
    except Exception:
        return 1
    return 2 if "v7" in kind else 1   # v5e/v6e: 1 TC/chip; v7x: 2 TC/chip


def _pick_tile_b(B, per_row_bytes, vmem_budget, min_steps):
    """Largest TB that divides B, fits the VMEM budget, is a multiple of 8
    (sublane alignment) and leaves >= min_steps grid steps (megacore only)."""
    max_tb = min(B, 2048, max(8, vmem_budget // max(per_row_bytes, 1)))
    if min_steps > 1 and B >= 8 * min_steps:
        max_tb = min(max_tb, B // min_steps)
    tb = (max_tb // 8) * 8
    while tb >= 8:
        if B % tb == 0:
            return tb
        tb -= 8
    return B                        # tiny / odd batch: single step


# --------------------------------------------------------------------------
# Wrapper
# --------------------------------------------------------------------------
def mixed_op_forward(batch_x, weights, params, *, tile_b=None):
    """Runs the fused MixedOp Pallas kernel.

    batch_x : (B, T) float32
    weights : (1, 2) float32 architecture weights (weights[0][0], weights[0][1])
    params  : dict of linear weights for the two surrogate ops
    Returns (out_1 (B, H), out_2 (B, F)) in float32.
    """
    B, T = batch_x.shape
    H = params["w_trans_pred"].shape[1]
    F = params["w_trans_fc"].shape[1]

    LANE = 128
    N = H + F
    N_pad = _round_up(N, LANE)      # lane-dense output -> unmasked full vst

    # ---- hoisted architecture-weight mix (once per call, f32, then bf16) ----
    # Linear ops => mixing the weights is exactly equivalent to mixing outputs.
    w0 = weights[0, 0]
    w1 = weights[0, 1]
    w_t = jnp.concatenate([params["w_trans_pred"], params["w_trans_fc"]], axis=1)
    w_s = jnp.concatenate([params["w_srnn_pred"], params["w_srnn_fc"]], axis=1)
    w_mix = w_t * w0 + w_s * w1                                     # (T, N) f32
    w_mix = jnp.pad(w_mix, ((0, 0), (0, N_pad - N))).astype(jnp.bfloat16)
    b_mix = params["b_trans_pred"] * w0 + params["b_srnn_pred"] * w1  # (1, H) f32
    b_mix = jnp.pad(b_mix, ((0, 0), (0, N_pad - H)))     # fc head has no bias

    x = batch_x.astype(jnp.float32)   # unpadded; cast to bf16 inside the kernel

    # ---- generation-aware tiling / VMEM budget ----
    vmem_cap = _tpu_vmem_bytes()
    per_row = 2 * T * 4 + 2 * N_pad * 4            # double-buffered x + out per row
    weight_resident = T * N_pad * 2 + N_pad * 4    # bf16 weight slab + f32 bias
    budget = max(int(0.4 * vmem_cap) - weight_resident, 1 << 20)
    min_steps = 2 if _num_tensorcores_per_chip() >= 2 else 1
    TB = _pick_tile_b(B, per_row, budget, min_steps) if tile_b is None else tile_b
    # TODO(synk): ragged batches would need a pl.cdiv grid + masked final tile.
    assert B % TB == 0, "batch must be divisible by the batch tile"

    vmem_need = TB * per_row + 2 * weight_resident + TB * T * 2   # + bf16 x temp
    vmem_limit = int(min(max(2 * vmem_need, 4 << 20), int(0.8 * vmem_cap)))

    batch_map = lambda i: (i, 0)
    const_map = lambda i: (0, 0)

    def _build(single_buffer_consts):
        const_kw = {}
        if single_buffer_consts:
            # Constant-index operands never change across the grid -> no need
            # to double-buffer them (halves weight VMEM; matters on v7x).
            const_kw = dict(pipeline_mode=pl.Buffered(1))
        return pl.pallas_call(
            _mixed_op_kernel,
            out_shape=jax.ShapeDtypeStruct((B, N_pad), jnp.float32),
            grid_spec=pltpu.PrefetchScalarGridSpec(
                num_scalar_prefetch=0,
                grid=(B // TB,),
                in_specs=[
                    pl.BlockSpec((TB, T), batch_map),                 # x tile (f32)
                    pl.BlockSpec((T, N_pad), const_map, **const_kw),  # w_mix (bf16)
                    pl.BlockSpec((1, N_pad), const_map, **const_kw),  # b_mix (f32)
                ],
                out_specs=pl.BlockSpec((TB, N_pad), batch_map),
            ),
            compiler_params=pltpu.CompilerParams(
                dimension_semantics=("parallel",),
                vmem_limit_bytes=vmem_limit),
        )

    try:
        out_slab = _build(True)(x, w_mix, b_mix)
        jax.block_until_ready(out_slab)
    except Exception:
        # Running JAX build rejected Buffered(1) -> fall back to default buffering.
        out_slab = _build(False)(x, w_mix, b_mix)

    # The module's signature requires two separate tensors -> slice the padded
    # lane-dense slab here (layout plumbing only; output kept in f32 to match
    # the PyTorch f32 output-mixing semantics).
    out1 = out_slab[:, :H]
    out2 = out_slab[:, H:N]
    return out1, out2


# --------------------------------------------------------------------------
# Cell: `steps` MixedOps are constructed, but forward only uses _ops[0]
# (exactly as in the reference PyTorch code).
# --------------------------------------------------------------------------
class Cell:
    def __init__(self, steps, spectral_transformer, T, H, F, key):
        self.spectral_transformer = spectral_transformer
        self._steps = steps
        # Deterministic parameter init for the surrogate transformer / srnn ops.
        k = jax.random.split(key, 6)
        s = 1.0 / jnp.sqrt(jnp.float32(T))
        self.params = {
            "w_trans_pred": (jax.random.normal(k[0], (T, H), jnp.float32) * s),
            "b_trans_pred": (jax.random.normal(k[1], (1, H), jnp.float32) * 0.1),
            "w_srnn_pred":  (jax.random.normal(k[2], (T, H), jnp.float32) * s),
            "b_srnn_pred":  (jax.random.normal(k[3], (1, H), jnp.float32) * 0.1),
            "w_trans_fc":   (jax.random.normal(k[4], (T, F), jnp.float32) * s),
            "w_srnn_fc":    (jax.random.normal(k[5], (T, F), jnp.float32) * s),
        }

    def forward(self, batch_x, batch_y, weights, srnn_arch_weights,
                spectral_transformer, spn=None, spn_2=None, turn_off_wein=False):
        if spectral_transformer:
            # TODO(synk): srnn_arch_weights (internal SRNN architecture weights)
            # have no defined semantics without the real SRNN module; unused here.
            return mixed_op_forward(batch_x, weights, self.params)
        # TODO(synk): non-spectral branch needs external CWSPN / EinsumNetwork
        # (WEin) SPN modules with mutable param providers — no Pallas equivalent
        # without those module definitions.
        raise NotImplementedError("non-spectral (SPN) branch not translatable")


# --------------------------------------------------------------------------
# Pure-JAX f32 reference for a correctness check
# --------------------------------------------------------------------------
def _reference(batch_x, weights, p):
    pred_t = batch_x @ p["w_trans_pred"] + p["b_trans_pred"]
    pred_s = batch_x @ p["w_srnn_pred"] + p["b_srnn_pred"]
    fc_t = batch_x @ p["w_trans_fc"]
    fc_s = batch_x @ p["w_srnn_fc"]
    out1 = pred_t * weights[0, 0] + pred_s * weights[0, 1]
    out2 = fc_t * weights[0, 0] + fc_s * weights[0, 1]
    return out1, out2


if __name__ == "__main__":
    key = jax.random.PRNGKey(0)
    k_x, k_y, k_w, k_cell = jax.random.split(key, 4)

    B, T, H, F = 32, 32, 16, 16    # batch, input seq len, forecast horizon, #coeffs
    batch_x = jax.random.normal(k_x, (B, T), jnp.float32)
    batch_y = jax.random.normal(k_y, (B, H), jnp.float32)   # unused by surrogate ops
    # DARTS architecture weights (softmaxed), shape (1, 2) like weights[0][:2]
    weights = jax.nn.softmax(jax.random.normal(k_w, (1, 2), jnp.float32), axis=-1)

    cell = Cell(steps=4, spectral_transformer=True, T=T, H=H, F=F, key=k_cell)

    out_1, out_2 = cell.forward(batch_x, batch_y, weights,
                                srnn_arch_weights=None,
                                spectral_transformer=True)
    jax.block_until_ready((out_1, out_2))

    ref_1, ref_2 = _reference(batch_x, weights, cell.params)
    assert out_1.shape == (B, H) and out_2.shape == (B, F)
    # bf16 matmul operands (f32 accumulation, f32 arch-weight mix) vs f32 ref.
    assert jnp.allclose(out_1, ref_1, atol=5e-2, rtol=5e-2), "out_1 mismatch"
    assert jnp.allclose(out_2, ref_2, atol=5e-2, rtol=5e-2), "out_2 mismatch"

    print("KERNEL_OK")
</pallas_src>

<mosaic_0001>
module attributes {stable_mosaic.version = 11 : i64} {
  func.func @_mixed_op_kernel(%arg0: i32, %arg1: memref<32x32xf32, #tpu.memory_space<vmem>>, %arg2: memref<32x128xbf16, #tpu.memory_space<vmem>>, %arg3: memref<1x128xf32, #tpu.memory_space<vmem>>, %arg4: memref<32x128xf32, #tpu.memory_space<vmem>>) attributes {dimension_semantics = [#tpu.dimension_semantics<parallel>], iteration_bounds = array<i64: 1>, scalar_prefetch = 0 : i64, scratch_operands = 0 : i64, tpu.core_type = #tpu.core_type<tc>, window_params = [{transform_indices = @transform_0, window_bounds = array<i64: 32, 32>}, {pipeline_mode = #tpu.pipeline_mode<synchronous>, transform_indices = @transform_1, window_bounds = array<i64: 32, 128>}, {pipeline_mode = #tpu.pipeline_mode<synchronous>, transform_indices = @transform_2, window_bounds = array<i64: 1, 128>}, {transform_indices = @transform_3, window_bounds = array<i64: 32, 128>}]} {
    %c0 = arith.constant 0 : index
    %c0_0 = arith.constant 0 : index
    %0 = vector.load %arg1[%c0, %c0_0] : memref<32x32xf32, #tpu.memory_space<vmem>>, vector<32x32xf32>
    %1 = arith.truncf %0 : vector<32x32xf32> to vector<32x32xbf16>
    %c0_1 = arith.constant 0 : index
    %c0_2 = arith.constant 0 : index
    %2 = vector.load %arg2[%c0_1, %c0_2] : memref<32x128xbf16, #tpu.memory_space<vmem>>, vector<32x128xbf16>
    %cst = arith.constant dense<0.000000e+00> : vector<32x128xf32>
    %3 = tpu.matmul %1, %2, %cst {dimension_numbers = #tpu.dot_dimension_numbers<[1], [0], [0], [1], [0, 0, 1, 1], [], []>} : vector<32x32xbf16>, vector<32x128xbf16>, vector<32x128xf32> -> vector<32x128xf32>
    %c0_3 = arith.constant 0 : index
    %c0_4 = arith.constant 0 : index
    %4 = vector.load %arg3[%c0_3, %c0_4] : memref<1x128xf32, #tpu.memory_space<vmem>>, vector<1x128xf32>
    %5 = vector.broadcast %4 : vector<1x128xf32> to vector<32x128xf32>
    %6 = arith.addf %3, %5 : vector<32x128xf32>
    %c0_5 = arith.constant 0 : index
    %c0_6 = arith.constant 0 : index
    %7 = vector.load %arg4[%c0_5, %c0_6] : memref<32x128xf32, #tpu.memory_space<vmem>>, vector<32x128xf32>
    tpu.vector_store %arg4[%c0_5, %c0_6], %6 {strides = array<i32>} : memref<32x128xf32, #tpu.memory_space<vmem>>, vector<32x128xf32>,
    return
  }
  func.func @transform_0(%arg0: i32) -> (i32, i32) {
    %c0_i32 = arith.constant 0 : i32
    %c0_i32_0 = arith.constant 0 : i32
    return %arg0, %c0_i32 : i32, i32
  }
  func.func @transform_1(%arg0: i32) -> (i32, i32) {
    %c0_i32 = arith.constant 0 : i32
    %c0_i32_0 = arith.constant 0 : i32
    %c0_i32_1 = arith.constant 0 : i32
    return %c0_i32, %c0_i32_0 : i32, i32
  }
  func.func @transform_2(%arg0: i32) -> (i32, i32) {
    %c0_i32 = arith.constant 0 : i32
    %c0_i32_0 = arith.constant 0 : i32
    %c0_i32_1 = arith.constant 0 : i32
    return %c0_i32, %c0_i32_0 : i32, i32
  }
  func.func @transform_3(%arg0: i32) -> (i32, i32) {
    %c0_i32 = arith.constant 0 : i32
    %c0_i32_0 = arith.constant 0 : i32
    return %arg0, %c0_i32 : i32, i32
  }
}

module attributes {stable_mosaic.version = 11 : i64} {
  func.func @_mixed_op_kernel(%arg0: i32, %arg1: memref<32x32xf32, #tpu.memory_space<vmem>>, %arg2: memref<32x128xbf16, #tpu.memory_space<vmem>>, %arg3: memref<1x128xf32, #tpu.memory_space<vmem>>, %arg4: memref<32x128xf32, #tpu.memory_space<vmem>>) attributes {dimension_semantics = [#tpu.dimension_semantics<parallel>], iteration_bounds = array<i64: 1>, scalar_prefetch = 0 : i64, scratch_operands = 0 : i64, tpu.core_type = #tpu.core_type<tc>, window_params = [{transform_indices = @transform_0, window_bounds = array<i64: 32, 32>}, {pipeline_mode = #tpu.pipeline_mode<synchronous>, transform_indices = @transform_1, window_bounds = array<i64: 32, 128>}, {pipeline_mode = #tpu.pipeline_mode<synchronous>, transform_indices = @transform_2, window_bounds = array<i64: 1, 128>}, {transform_indices = @transform_3, window_bounds = array<i64: 32, 128>}]} {
    %c0 = arith.constant 0 : index
    %c0_0 = arith.constant 0 : index
    %0 = vector.load %arg1[%c0, %c0_0] : memref<32x32xf32, #tpu.memory_space<vmem>>, vector<32x32xf32>
    %1 = arith.truncf %0 : vector<32x32xf32> to vector<32x32xbf16>
    %c0_1 = arith.constant 0 : index
    %c0_2 = arith.constant 0 : index
    %2 = vector.load %arg2[%c0_1, %c0_2] : memref<32x128xbf16, #tpu.memory_space<vmem>>, vector<32x128xbf16>
    %cst = arith.constant dense<0.000000e+00> : vector<32x128xf32>
    %3 = tpu.matmul %1, %2, %cst {dimension_numbers = #tpu.dot_dimension_numbers<[1], [0], [0], [1], [0, 0, 1, 1], [], []>} : vector<32x32xbf16>, vector<32x128xbf16>, vector<32x128xf32> -> vector<32x128xf32>
    %c0_3 = arith.constant 0 : index
    %c0_4 = arith.constant 0 : index
    %4 = vector.load %arg3[%c0_3, %c0_4] : memref<1x128xf32, #tpu.memory_space<vmem>>, vector<1x128xf32>
    %5 = vector.broadcast %4 : vector<1x128xf32> to vector<32x128xf32>
    %6 = arith.addf %3, %5 : vector<32x128xf32>
    %c0_5 = arith.constant 0 : index
    %c0_6 = arith.constant 0 : index
    %7 = vector.load %arg4[%c0_5, %c0_6] : memref<32x128xf32, #tpu.memory_space<vmem>>, vector<32x128xf32>
    tpu.vector_store %arg4[%c0_5, %c0_6], %6 {strides = array<i32>} : memref<32x128xf32, #tpu.memory_space<vmem>>, vector<32x128xf32>,
    return
  }
  func.func @transform_0(%arg0: i32) -> (i32, i32) {
    %c0_i32 = arith.constant 0 : i32
    %c0_i32_0 = arith.constant 0 : i32
    return %arg0, %c0_i32 : i32, i32
  }
  func.func @transform_1(%arg0: i32) -> (i32, i32) {
    %c0_i32 = arith.constant 0 : i32
    %c0_i32_0 = arith.constant 0 : i32
    %c0_i32_1 = arith.constant 0 : i32
    return %c0_i32, %c0_i32_0 : i32, i32
  }
  func.func @transform_2(%arg0: i32) -> (i32, i32) {
    %c0_i32 = arith.constant 0 : i32
    %c0_i32_0 = arith.constant 0 : i32
    %c0_i32_1 = arith.constant 0 : i32
    return %c0_i32, %c0_i32_0 : i32, i32
  }
  func.func @transform_3(%arg0: i32) -> (i32, i32) {
    %c0_i32 = arith.constant 0 : i32
    %c0_i32_0 = arith.constant 0 : i32
    return %arg0, %c0_i32 : i32, i32
  }
}

</mosaic_0001>

<bundles_post_ra>
// kernel: tpu_custom_call.1
= control target key start
LH: loop header
LB: loop body
LE: loop exit
PB: predicated region body
PF: predicated region fallthrough
CT: control target
= control target key end

     0   :  { %8 = vsyncpa [#allocation3], 0  ;;  %s321_s0 = inlined_call_operand.hbm [shape: f32[32,32], index: 0, kind: input, shape index: {}]   ;;  %s322_s1 = inlined_call_operand.hbm [shape: bf16[32,128], index: 1, kind: input, shape index: {}]   ;;  %s323_s2 = inlined_call_operand.vmem [shape: f32[1,128], index: 2, kind: input, shape index: {}]   ;;  %s324_s3 = inlined_call_operand.hbm [shape: f32[32,128], index: 3, kind: output, shape index: {}]  }
   0x1   :  { %9 = vsyncpa [#allocation6], 0 }
   0x2   :  { %10 = vsyncpa [#allocation4], 0  ;;  %s249_s12 = smov [#allocation2]   ;;  %s177_s16 = scalar_lea.hbm %s321_s0, 512 }
   0x3   :  { %s16_s13 = sshll.u32 %s249_s12, 4  ;;  %p178_p0 = scmp.ne.s32.totalorder %s321_s0, %s177_s16  ;;  %s17_s13 = int_to_ptr.vmem [resolvable:$true] %s16_s13 }
   0x4   :  { %p181_p1 = scmp.lt.u32.totalorder %s177_s16, %s321_s0 }
   0x6   :  { %p183_p2 = pnand %p181_p1, %p178_p0 }
   0x8   :  { %186 = shalt.err (!%p183_p2)
}
   0x9   :  { %s187_s21 = scalar_lea.vmem %s17_s13, 512  ;;  %p192_p4 = scmp.lt.s32.totalorder %s17_s13, %s17_s13 }
   0xa   :  { %p188_p3 = scmp.ne.s32.totalorder %s17_s13, %s187_s21  ;;  %p193_p5 = scmp.lt.s32.totalorder %s187_s21, %s187_s21 }
   0xc   :  { %p194_p6 = por %p193_p5, %p192_p4 }
   0xe   :  { %p195_p7 = pnand %p194_p6, %p188_p3 }
  0x10   :  { %198 = shalt.err (!%p195_p7)
}
  0x11   :  { %s250_s22 = smov 128   ;;  %s251_s23 = smov 8  }
  0x12   :  { %22 = dma.hbm_to_vmem [thread:$0]  %s321_s0, 512, %s17_s13, [#allocation3], %s250_s22, %s250_s22, %s251_s23  }
  0x13   :  { %s252_s26 = smov [#allocation5]   ;;  %s199_s30 = scalar_lea.hbm %s322_s1, 256 }
  0x14   :  { %s28_s27 = sshll.u32 %s252_s26, 4  ;;  %p200_p8 = scmp.ne.s32.totalorder %s322_s1, %s199_s30  ;;  %s29_s27 = int_to_ptr.vmem [resolvable:$true] %s28_s27 }
  0x15   :  { %p203_p9 = scmp.lt.u32.totalorder %s199_s30, %s322_s1 }
  0x17   :  { %p205_p10 = pnand %p203_p9, %p200_p8 }
  0x19   :  { %208 = shalt.err (!%p205_p10)
}
  0x1a   :  { %s209_s8 = scalar_lea.vmem %s29_s27, 256  ;;  %p214_p12 = scmp.lt.s32.totalorder %s29_s27, %s29_s27 }
  0x1b   :  { %p210_p11 = scmp.ne.s32.totalorder %s29_s27, %s209_s8  ;;  %p215_p13 = scmp.lt.s32.totalorder %s209_s8, %s209_s8 }
  0x1d   :  { %p216_p0 = por %p215_p13, %p214_p12 }
  0x1f   :  { %p217_p1 = pnand %p216_p0, %p210_p11 }
  0x21   :  { %220 = shalt.err (!%p217_p1)
}
  0x22   :  { %s253_s0 = smov 64   ;;  %s254_s9 = smov 4  }
  0x23   :  { %34 = dma.hbm_to_vmem [thread:$0]  %s322_s1, 256, %s29_s27, [#allocation6], %s253_s0, %s253_s0, %s254_s9  }
  0x24   :  { %243 = dma.done.wait [#allocation3], 512  }
  0x25   :  { %244 = vsyncadd [#allocation3], 4294966784 }
  0x26   :  { %245 = dma.done.wait [#allocation6], 256  }
  0x27   :  { %246 = vsyncadd [#allocation6], 4294967040  ;;  %v175_v0 = vld [vmem:[#allocation5] sm:$0xff]   ;;  %v176_v1 = vld [vmem:[#allocation5 + $0x8] sm:$0xff]   ;;  %vm73_vm0 = vcmask 261120   ;;  %s255_s13 = smov [#allocation7]  }
  0x28   :  { %160 = vmatprep.subr.bf16.mxu0 %v175_v0  ;;  %v44_v2 = vld [vmem:[#allocation2] sm:$0xff]  ;;  %v45_v3 = vld [vmem:[#allocation2 + $0x8] sm:$0xff]  ;;  %v46_v5 = vld [vmem:[#allocation2 + $0x10] sm:$0xff]  ;;  %s138_s14 = sshll.u32 %s255_s13, 4  ;;  %s139_s14 = int_to_ptr.vmem [resolvable:$true] %s138_s14 }
  0x29   :  { %161 = vmatpush3.bf16.msra.mxu0 %v175_v0  ;;  %v48_v4 = vpack.c.bf16 %v45_v3, %v44_v2  ;;  %v47_v6 = vld [vmem:[#allocation2 + $0x18] sm:$0xff]  ;;  %v151_v8 = vld [vmem:[%s323_s2] ss:$0 sm:$0xff]  ;;  %s221_s15 = scalar_lea.vmem %s139_s14, 512  ;;  %p226_p3 = scmp.lt.s32.totalorder %s139_s14, %s139_s14 }
  0x2a   :  { %162 = vmatprep.subr.bf16.mxu0 %v176_v1  ;;  %v49_v7 = vpack.c.bf16 %v47_v6, %v46_v5  ;;  %p222_p2 = scmp.ne.s32.totalorder %s139_s14, %s221_s15  ;;  %p227_p4 = scmp.lt.s32.totalorder %s221_s15, %s221_s15 }
  0x2b   :  { %164 = vmatprep.mubr.msk.bf16.mxu0 %vm73_vm0, %v48_v4 }
  0x2c   :  { %p228_p5 = por %p227_p4, %p226_p3 }
  0x2d   :  { %163 = vmatpush3.bf16.msra.mxu0 %v176_v1 }
  0x2e   :  { %p229_p6 = pnand %p228_p5, %p222_p2 }
  0x30   :  { %165 = vmatmul.mubr.msk.bf16.vlgmr.msra.gmra.mrb[0].mxu0 %vm73_vm0, %v49_v7 }
 0x103   :  { %v166_v9 = vpop.f32.mrb[0].mxu0 }
 0x104   :  { %v123_v10 = vadd.f32 %v166_v9, %v151_v8  ;;  %v114_v11 = vpop.f32.mrb[1].mxu0 }
 0x105   :  { %v115_v12 = vadd.f32 %v151_v8, %v114_v11  ;;  %v167_v13 = vpop.f32.mrb[2].mxu0 }
 0x106   :  { %131 = vst [vmem:[#allocation7 + $0x10] sm:$0xff] %v123_v10  ;;  %v126_v14 = vadd.f32 %v167_v13, %v151_v8  ;;  %v117_v15 = vpop.f32.mrb[3].mxu0 }
 0x107   :  { %129 = vst [vmem:[#allocation7] sm:$0xff] %v115_v12  ;;  %v118_v16 = vadd.f32 %v151_v8, %v117_v15 }
 0x108   :  { %132 = vst [vmem:[#allocation7 + $0x18] sm:$0xff] %v126_v14 }
 0x109   :  { %130 = vst [vmem:[#allocation7 + $0x8] sm:$0xff] %v118_v16 }
 0x10a   :  { %232 = shalt.err (!%p229_p6)
}
 0x10b   :  { %s233_s17 = scalar_lea.hbm %s324_s3, 512 }
 0x10c   :  { %p234_p7 = scmp.ne.s32.totalorder %s324_s3, %s233_s17  ;;  %p237_p8 = scmp.lt.u32.totalorder %s233_s17, %s324_s3 }
 0x10e   :  { %p239_p9 = pnand %p237_p8, %p234_p7 }
 0x110   :  { %242 = shalt.err (!%p239_p9)
}
 0x111   :  { %144 = dma.vmem_to_hbm [thread:$0]  %s139_s14, 512, %s324_s3, [#allocation4], %s250_s22, %s250_s22, %s251_s23  }
 0x112   :  { %247 = dma.done.wait [#allocation4], 512  }
 0x113   :  { %248 = vsyncadd [#allocation4], 4294966784 }
 0x114   :  { %148 = vsyncpa [#allocation3], 1 }
 0x115   :  { %149 = vsyncpa [#allocation6], 1 }
 0x116   :  { %150 = vsyncpa [#allocation4], 1 }

// kernel: tpu_custom_call.1
= control target key start
LH: loop header
LB: loop body
LE: loop exit
PB: predicated region body
PF: predicated region fallthrough
CT: control target
= control target key end

     0   :  { %8 = vsyncpa [#allocation3], 0  ;;  %s321_s0 = inlined_call_operand.hbm [shape: f32[32,32], index: 0, kind: input, shape index: {}]   ;;  %s322_s1 = inlined_call_operand.hbm [shape: bf16[32,128], index: 1, kind: input, shape index: {}]   ;;  %s323_s2 = inlined_call_operand.vmem [shape: f32[1,128], index: 2, kind: input, shape index: {}]   ;;  %s324_s3 = inlined_call_operand.hbm [shape: f32[32,128], index: 3, kind: output, shape index: {}]  }
   0x1   :  { %9 = vsyncpa [#allocation6], 0 }
   0x2   :  { %10 = vsyncpa [#allocation4], 0  ;;  %s249_s12 = smov [#allocation2]   ;;  %s177_s16 = scalar_lea.hbm %s321_s0, 512 }
   0x3   :  { %s16_s13 = sshll.u32 %s249_s12, 4  ;;  %p178_p0 = scmp.ne.s32.totalorder %s321_s0, %s177_s16  ;;  %s17_s13 = int_to_ptr.vmem [resolvable:$true] %s16_s13 }
   0x4   :  { %p181_p1 = scmp.lt.u32.totalorder %s177_s16, %s321_s0 }
   0x6   :  { %p183_p2 = pnand %p181_p1, %p178_p0 }
   0x8   :  { %186 = shalt.err (!%p183_p2)
}
   0x9   :  { %s187_s21 = scalar_lea.vmem %s17_s13, 512  ;;  %p192_p4 = scmp.lt.s32.totalorder %s17_s13, %s17_s13 }
   0xa   :  { %p188_p3 = scmp.ne.s32.totalorder %s17_s13, %s187_s21  ;;  %p193_p5 = scmp.lt.s32.totalorder %s187_s21, %s187_s21 }
   0xc   :  { %p194_p6 = por %p193_p5, %p192_p4 }
   0xe   :  { %p195_p7 = pnand %p194_p6, %p188_p3 }
  0x10   :  { %198 = shalt.err (!%p195_p7)
}
  0x11   :  { %s250_s22 = smov 128   ;;  %s251_s23 = smov 8  }
  0x12   :  { %22 = dma.hbm_to_vmem [thread:$0]  %s321_s0, 512, %s17_s13, [#allocation3], %s250_s22, %s250_s22, %s251_s23  }
  0x13   :  { %s252_s26 = smov [#allocation5]   ;;  %s199_s30 = scalar_lea.hbm %s322_s1, 256 }
  0x14   :  { %s28_s27 = sshll.u32 %s252_s26, 4  ;;  %p200_p8 = scmp.ne.s32.totalorder %s322_s1, %s199_s30  ;;  %s29_s27 = int_to_ptr.vmem [resolvable:$true] %s28_s27 }
  0x15   :  { %p203_p9 = scmp.lt.u32.totalorder %s199_s30, %s322_s1 }
  0x17   :  { %p205_p10 = pnand %p203_p9, %p200_p8 }
  0x19   :  { %208 = shalt.err (!%p205_p10)
}
  0x1a   :  { %s209_s8 = scalar_lea.vmem %s29_s27, 256  ;;  %p214_p12 = scmp.lt.s32.totalorder %s29_s27, %s29_s27 }
  0x1b   :  { %p210_p11 = scmp.ne.s32.totalorder %s29_s27, %s209_s8  ;;  %p215_p13 = scmp.lt.s32.totalorder %s209_s8, %s209_s8 }
  0x1d   :  { %p216_p0 = por %p215_p13, %p214_p12 }
  0x1f   :  { %p217_p1 = pnand %p216_p0, %p210_p11 }
  0x21   :  { %220 = shalt.err (!%p217_p1)
}
  0x22   :  { %s253_s0 = smov 64   ;;  %s254_s9 = smov 4  }
  0x23   :  { %34 = dma.hbm_to_vmem [thread:$0]  %s322_s1, 256, %s29_s27, [#allocation6], %s253_s0, %s253_s0, %s254_s9  }
  0x24   :  { %243 = dma.done.wait [#allocation3], 512  }
  0x25   :  { %244 = vsyncadd [#allocation3], 4294966784 }
  0x26   :  { %245 = dma.done.wait [#allocation6], 256  }
  0x27   :  { %246 = vsyncadd [#allocation6], 4294967040  ;;  %v175_v0 = vld [vmem:[#allocation5] sm:$0xff]   ;;  %v176_v1 = vld [vmem:[#allocation5 + $0x8] sm:$0xff]   ;;  %vm73_vm0 = vcmask 261120   ;;  %s255_s13 = smov [#allocation7]  }
  0x28   :  { %160 = vmatprep.subr.bf16.mxu0 %v175_v0  ;;  %v44_v2 = vld [vmem:[#allocation2] sm:$0xff]  ;;  %v45_v3 = vld [vmem:[#allocation2 + $0x8] sm:$0xff]  ;;  %v46_v5 = vld [vmem:[#allocation2 + $0x10] sm:$0xff]  ;;  %s138_s14 = sshll.u32 %s255_s13, 4  ;;  %s139_s14 = int_to_ptr.vmem [resolvable:$true] %s138_s14 }
  0x29   :  { %161 = vmatpush3.bf16.msra.mxu0 %v175_v0  ;;  %v48_v4 = vpack.c.bf16 %v45_v3, %v44_v2  ;;  %v47_v6 = vld [vmem:[#allocation2 + $0x18] sm:$0xff]  ;;  %v151_v8 = vld [vmem:[%s323_s2] ss:$0 sm:$0xff]  ;;  %s221_s15 = scalar_lea.vmem %s139_s14, 512  ;;  %p226_p3 = scmp.lt.s32.totalorder %s139_s14, %s139_s14 }
  0x2a   :  { %162 = vmatprep.subr.bf16.mxu0 %v176_v1  ;;  %v49_v7 = vpack.c.bf16 %v47_v6, %v46_v5  ;;  %p222_p2 = scmp.ne.s32.totalorder %s139_s14, %s221_s15  ;;  %p227_p4 = scmp.lt.s32.totalorder %s221_s15, %s221_s15 }
  0x2b   :  { %164 = vmatprep.mubr.msk.bf16.mxu0 %vm73_vm0, %v48_v4 }
  0x2c   :  { %p228_p5 = por %p227_p4, %p226_p3 }
  0x2d   :  { %163 = vmatpush3.bf16.msra.mxu0 %v176_v1 }
  0x2e   :  { %p229_p6 = pnand %p228_p5, %p222_p2 }
  0x30   :  { %165 = vmatmul.mubr.msk.bf16.vlgmr.msra.gmra.mrb[0].mxu0 %vm73_vm0, %v49_v7 }
 0x103   :  { %v166_v9 = vpop.f32.mrb[0].mxu0 }
 0x104   :  { %v123_v10 = vadd.f32 %v166_v9, %v151_v8  ;;  %v114_v11 = vpop.f32.mrb[1].mxu0 }
 0x105   :  { %v115_v12 = vadd.f32 %v151_v8, %v114_v11  ;;  %v167_v13 = vpop.f32.mrb[2].mxu0 }
 0x106   :  { %131 = vst [vmem:[#allocation7 + $0x10] sm:$0xff] %v123_v10  ;;  %v126_v14 = vadd.f32 %v167_v13, %v151_v8  ;;  %v117_v15 = vpop.f32.mrb[3].mxu0 }
 0x107   :  { %129 = vst [vmem:[#allocation7] sm:$0xff] %v115_v12  ;;  %v118_v16 = vadd.f32 %v151_v8, %v117_v15 }
 0x108   :  { %132 = vst [vmem:[#allocation7 + $0x18] sm:$0xff] %v126_v14 }
 0x109   :  { %130 = vst [vmem:[#allocation7 + $0x8] sm:$0xff] %v118_v16 }
 0x10a   :  { %232 = shalt.err (!%p229_p6)
}
 0x10b   :  { %s233_s17 = scalar_lea.hbm %s324_s3, 512 }
 0x10c   :  { %p234_p7 = scmp.ne.s32.totalorder %s324_s3, %s233_s17  ;;  %p237_p8 = scmp.lt.u32.totalorder %s233_s17, %s324_s3 }
 0x10e   :  { %p239_p9 = pnand %p237_p8, %p234_p7 }
 0x110   :  { %242 = shalt.err (!%p239_p9)
}
 0x111   :  { %144 = dma.vmem_to_hbm [thread:$0]  %s139_s14, 512, %s324_s3, [#allocation4], %s250_s22, %s250_s22, %s251_s23  }
 0x112   :  { %247 = dma.done.wait [#allocation4], 512  }
 0x113   :  { %248 = vsyncadd [#allocation4], 4294966784 }
 0x114   :  { %148 = vsyncpa [#allocation3], 1 }
 0x115   :  { %149 = vsyncpa [#allocation6], 1 }
 0x116   :  { %150 = vsyncpa [#allocation4], 1 }

</bundles_post_ra>
